<compile_context>
chip_gen: v7x
topology: tpu7x:2x2x1
jax: 0.10.0
libtpu: 0.0.40
codegen_flags: <defaults>
</compile_context>

<pallas_src>
import functools

import jax
import jax.numpy as jnp
from jax import lax
from jax.experimental import pallas as pl
from jax.experimental.pallas import tpu as pltpu


def _round_up(v: int, m: int) -> int:
    return (v + m - 1) // m * m


def _chamfer_kernel(x_ref, yt_ref, ny2_ref, o_ref, minacc_ref,
                    *, p1, tile_p1, tile_p2):
    i = pl.program_id(1)            # P1-tile index
    j = pl.program_id(2)            # P2-tile index (reduction axis)
    nj = pl.num_programs(2)

    # Running-min accumulator for this (batch, P1-tile): init at first P2 step.
    @pl.when(j == 0)
    def _():
        minacc_ref[...] = jnp.full_like(minacc_ref, jnp.inf)

    x = x_ref[0]        # (tile_p1, D_pad)  source points (resident across j)
    yt = yt_ref[0]      # (D_pad, tile_p2)  target points, transposed
    ny2 = ny2_ref[0]    # (1, tile_p2)      ||y_j||^2, +inf in padded columns

    # Cross term on the MXU. (x + x) @ yt == 2 * x.y, so the big
    # (tile_p1, tile_p2) slab only needs a single VPU subtract afterwards.
    xy2 = jnp.dot(x + x, yt, preferred_element_type=jnp.float32)
    d = ny2 - xy2                                              # (tile_p1, tile_p2)

    # Lane-fold down to 128 columns using elementwise (VPU) minimums over
    # static, 128-aligned slices — no cross-lane reduce, no relayout.
    m = d[:, 0:128]
    for t in range(1, tile_p2 // 128):
        m = jnp.minimum(m, d[:, t * 128:(t + 1) * 128])
    minacc_ref[...] = jnp.minimum(minacc_ref[...], m)

    # Finalize this (batch, P1-tile): one cross-lane min, add ||x||^2, clamp,
    # mask padded source rows, sum over points, single output write.
    @pl.when(j == nj - 1)
    def _():
        nx2 = jnp.sum(x * x, axis=-1, keepdims=True)           # (tile_p1, 1)
        min_d = jnp.min(minacc_ref[...], axis=-1, keepdims=True) + nx2
        min_d = jnp.maximum(min_d, 0.0)                        # cancellation guard
        if p1 % tile_p1 != 0:
            row = lax.broadcasted_iota(jnp.int32, (tile_p1, 1), 0) + i * tile_p1
            min_d = jnp.where(row < p1, min_d, 0.0)
        o_ref[...] = jnp.sum(min_d).reshape(o_ref.shape)


def chamfer_distance_pallas(source_cloud: jax.Array,
                            target_cloud: jax.Array,
                            *, tile_p1: int = 256, tile_p2: int = 1024) -> jax.Array:
    """source_cloud: (N, P1, D), target_cloud: (N, P2, D) -> scalar f32."""
    x = source_cloud.astype(jnp.float32)
    y = target_cloud.astype(jnp.float32)
    N, P1, D = x.shape
    P2 = y.shape[1]

    # Pad D for a clean MXU contracting dim / DMA; clamp tiles for small inputs.
    d_pad = _round_up(D, 8)
    tile_p1 = min(tile_p1, _round_up(P1, 8))
    tile_p2 = min(tile_p2, _round_up(P2, 128))
    p1_pad = _round_up(P1, tile_p1)
    p2_pad = _round_up(P2, tile_p2)

    xp = jnp.pad(x, ((0, 0), (0, p1_pad - P1), (0, d_pad - D)))
    ytp = jnp.pad(jnp.transpose(y, (0, 2, 1)),
                  ((0, 0), (0, d_pad - D), (0, p2_pad - P2)))
    # ||y_j||^2 once per target point; +inf in padded columns so they never win
    # the min.  Keeps the hot loop free of the sublane reduce + column mask.
    ny2 = jnp.sum(y * y, axis=-1)[:, None, :]                   # (N, 1, P2)
    ny2p = jnp.pad(ny2, ((0, 0), (0, 0), (0, p2_pad - P2)),
                   constant_values=float("inf"))

    t1 = p1_pad // tile_p1
    t2 = p2_pad // tile_p2

    kernel = functools.partial(_chamfer_kernel, p1=P1,
                               tile_p1=tile_p1, tile_p2=tile_p2)

    flops = 2 * N * p1_pad * p2_pad * d_pad + 3 * N * p1_pad * p2_pad
    bytes_accessed = (xp.size + t1 * (ytp.size + ny2p.size) + N * t1) * 4

    partial_sums = pl.pallas_call(
        kernel,
        out_shape=jax.ShapeDtypeStruct((N, t1, 1, 1), jnp.float32),
        grid_spec=pltpu.PrefetchScalarGridSpec(
            num_scalar_prefetch=0,
            grid=(N, t1, t2),
            in_specs=[
                # x tile is resident across the inner P2 axis (no re-DMA).
                pl.BlockSpec((1, tile_p1, d_pad), lambda b, i, j: (b, i, 0)),
                pl.BlockSpec((1, d_pad, tile_p2), lambda b, i, j: (b, 0, j)),
                pl.BlockSpec((1, 1, tile_p2), lambda b, i, j: (b, 0, j)),
            ],
            out_specs=pl.BlockSpec((1, 1, 1, 1), lambda b, i, j: (b, i, 0, 0)),
            scratch_shapes=[pltpu.VMEM((tile_p1, 128), jnp.float32)],
        ),
        compiler_params=pltpu.CompilerParams(
            dimension_semantics=("parallel", "parallel", "arbitrary"),
            vmem_limit_bytes=32 * 1024 * 1024,
        ),
        cost_estimate=pl.CostEstimate(flops=flops, transcendentals=0,
                                      bytes_accessed=bytes_accessed),
    )(xp, ytp, ny2p)

    per_batch = jnp.sum(partial_sums.reshape(N, t1), axis=1)   # point_reduction='sum'
    return jnp.mean(per_batch)                                 # batch_reduction='mean'


def chamfer_reference(source_cloud, target_cloud):
    # Pure-JAX reference (direct differences) for verification.
    diff = source_cloud[:, :, None, :] - target_cloud[:, None, :, :]   # (N,P1,P2,D)
    d = jnp.sum(diff * diff, axis=-1)                                  # (N,P1,P2)
    min_d = jnp.min(d, axis=-1)                                        # (N,P1)
    per_batch = jnp.sum(min_d, axis=-1)                                # point 'sum'
    return jnp.mean(per_batch)                                         # batch 'mean'


# TODO(synk): x_lengths / y_lengths / normals / weights / L1-norm / bidirectional
# branches of chamfer_distance are not exercised by ChamferDistance.forward's
# defaults and are not implemented here.

if __name__ == "__main__":
    key = jax.random.PRNGKey(0)
    k1, k2 = jax.random.split(key)

    # Small, non-tile-aligned shapes to exercise padding / masking / tiling.
    N, P1, P2, D = 2, 200, 300, 3
    source = jax.random.normal(k1, (N, P1, D), dtype=jnp.float32)
    target = jax.random.normal(k2, (N, P2, D), dtype=jnp.float32)

    ref = chamfer_reference(source, target)

    # Small tiles -> multi-step P2 reduction + multiple P1 tiles + masks.
    loss = chamfer_distance_pallas(source, target, tile_p1=128, tile_p2=128)
    jax.block_until_ready(loss)
    assert jnp.allclose(loss, ref, rtol=1e-4, atol=1e-4), (loss, ref)

    # Default (larger-tile) path: single P2 step, whole-cloud tiles.
    loss2 = chamfer_distance_pallas(source, target)
    jax.block_until_ready(loss2)
    assert jnp.allclose(loss2, ref, rtol=1e-4, atol=1e-4), (loss2, ref)

    print("KERNEL_OK")
</pallas_src>

<mosaic_0001>
module attributes {stable_mosaic.version = 11 : i64} {
  func.func @_chamfer_kernel(%arg0: i32, %arg1: i32, %arg2: i32, %arg3: memref<1x128x8xf32, #tpu.memory_space<vmem>>, %arg4: memref<1x8x128xf32, #tpu.memory_space<vmem>>, %arg5: memref<1x1x128xf32, #tpu.memory_space<vmem>>, %arg6: memref<1x1x1x1xf32, #tpu.memory_space<vmem>>, %arg7: memref<128x128xf32, #tpu.memory_space<vmem>>) attributes {dimension_semantics = [#tpu.dimension_semantics<parallel>, #tpu.dimension_semantics<parallel>, #tpu.dimension_semantics<arbitrary>], iteration_bounds = array<i64: 2, 2, 3>, scalar_prefetch = 0 : i64, scratch_operands = 1 : i64, tpu.core_type = #tpu.core_type<tc>, window_params = [{transform_indices = @transform_0, window_bounds = array<i64: 1, 128, 8>}, {transform_indices = @transform_1, window_bounds = array<i64: 1, 8, 128>}, {transform_indices = @transform_2, window_bounds = array<i64: 1, 1, 128>}, {transform_indices = @transform_3, window_bounds = array<i64: 1, 1, 1, 1>}]} {
    %c0_i32 = arith.constant 0 : i32
    %0 = arith.cmpi eq, %arg2, %c0_i32 : i32
    %1 = arith.extui %0 : i1 to i32
    %c0_i32_0 = arith.constant 0 : i32
    %2 = arith.cmpi ne, %1, %c0_i32_0 : i32
    scf.if %2 {
      %cst_14 = arith.constant 0x7F800000 : f32
      %19 = vector.broadcast %cst_14 : f32 to vector<128x128xf32>
      %c0_15 = arith.constant 0 : index
      %c0_16 = arith.constant 0 : index
      %20 = vector.load %arg7[%c0_15, %c0_16] : memref<128x128xf32, #tpu.memory_space<vmem>>, vector<128x128xf32>
      tpu.vector_store %arg7[%c0_15, %c0_16], %19 {strides = array<i32>} : memref<128x128xf32, #tpu.memory_space<vmem>>, vector<128x128xf32>,
    } else {
    }
    %c0 = arith.constant 0 : index
    %c0_1 = arith.constant 0 : index
    %c0_2 = arith.constant 0 : index
    %3 = vector.load %arg3[%c0, %c0_1, %c0_2] : memref<1x128x8xf32, #tpu.memory_space<vmem>>, vector<1x128x8xf32>
    %4 = vector.shape_cast %3 : vector<1x128x8xf32> to vector<128x8xf32>
    %c0_3 = arith.constant 0 : index
    %c0_4 = arith.constant 0 : index
    %c0_5 = arith.constant 0 : index
    %5 = vector.load %arg4[%c0_3, %c0_4, %c0_5] : memref<1x8x128xf32, #tpu.memory_space<vmem>>, vector<1x8x128xf32>
    %6 = vector.shape_cast %5 : vector<1x8x128xf32> to vector<8x128xf32>
    %c0_6 = arith.constant 0 : index
    %c0_7 = arith.constant 0 : index
    %c0_8 = arith.constant 0 : index
    %7 = vector.load %arg5[%c0_6, %c0_7, %c0_8] : memref<1x1x128xf32, #tpu.memory_space<vmem>>, vector<1x1x128xf32>
    %8 = vector.shape_cast %7 : vector<1x1x128xf32> to vector<1x128xf32>
    %9 = arith.addf %4, %4 : vector<128x8xf32>
    %cst = arith.constant dense<0.000000e+00> : vector<128x128xf32>
    %10 = tpu.matmul %9, %6, %cst {dimension_numbers = #tpu.dot_dimension_numbers<[1], [0], [0], [1], [0, 0, 1, 1], [], []>} : vector<128x8xf32>, vector<8x128xf32>, vector<128x128xf32> -> vector<128x128xf32>
    %11 = vector.broadcast %8 : vector<1x128xf32> to vector<128x128xf32>
    %12 = arith.subf %11, %10 : vector<128x128xf32>
    %c0_9 = arith.constant 0 : index
    %c0_10 = arith.constant 0 : index
    %13 = vector.load %arg7[%c0_9, %c0_10] : memref<128x128xf32, #tpu.memory_space<vmem>>, vector<128x128xf32>
    %14 = arith.minimumf %13, %12 : vector<128x128xf32>
    %c0_11 = arith.constant 0 : index
    %c0_12 = arith.constant 0 : index
    %15 = vector.load %arg7[%c0_11, %c0_12] : memref<128x128xf32, #tpu.memory_space<vmem>>, vector<128x128xf32>
    tpu.vector_store %arg7[%c0_11, %c0_12], %14 {strides = array<i32>} : memref<128x128xf32, #tpu.memory_space<vmem>>, vector<128x128xf32>,
    %c2_i32 = arith.constant 2 : i32
    %16 = arith.cmpi eq, %arg2, %c2_i32 : i32
    %17 = arith.extui %16 : i1 to i32
    %c0_i32_13 = arith.constant 0 : i32
    %18 = arith.cmpi ne, %17, %c0_i32_13 : i32
    scf.if %18 {
      %19 = arith.mulf %4, %4 : vector<128x8xf32>
      %cst_14 = arith.constant dense<0.000000e+00> : vector<128xf32>
      %20 = vector.multi_reduction <add>, %19, %cst_14 [1] : vector<128x8xf32> to vector<128xf32>
      %21 = vector.shape_cast %20 : vector<128xf32> to vector<128x1xf32>
      %c0_15 = arith.constant 0 : index
      %c0_16 = arith.constant 0 : index
      %22 = vector.load %arg7[%c0_15, %c0_16] : memref<128x128xf32, #tpu.memory_space<vmem>>, vector<128x128xf32>
      %cst_17 = arith.constant dense<0x7F800000> : vector<128xf32>
      %23 = vector.multi_reduction <minimumf>, %22, %cst_17 [1] : vector<128x128xf32> to vector<128xf32>
      %24 = vector.shape_cast %23 : vector<128xf32> to vector<128x1xf32>
      %25 = arith.addf %24, %21 : vector<128x1xf32>
      %cst_18 = arith.constant 0.000000e+00 : f32
      %26 = vector.broadcast %cst_18 : f32 to vector<128x1xf32>
      %27 = arith.maximumf %25, %26 : vector<128x1xf32>
      %28 = tpu.iota {dimensions = array<i32: 0>} : vector<128x1xi32>
      %c128_i32 = arith.constant 128 : i32
      %29 = arith.muli %arg1, %c128_i32 : i32
      %30 = vector.broadcast %29 : i32 to vector<128x1xi32>
      %31 = arith.addi %28, %30 : vector<128x1xi32>
      %c200_i32 = arith.constant 200 : i32
      %32 = vector.broadcast %c200_i32 : i32 to vector<128x1xi32>
      %33 = arith.cmpi slt, %31, %32 : vector<128x1xi32>
      %cst_19 = arith.constant 0.000000e+00 : f32
      %34 = vector.broadcast %cst_19 : f32 to vector<128x1xf32>
      %35 = arith.select %33, %27, %34 : vector<128x1xi1>, vector<128x1xf32>
      %36 = vector.shape_cast %35 : vector<128x1xf32> to vector<1x128x1xf32>
      %cst_20 = arith.constant dense<0.000000e+00> : vector<1xf32>
      %37 = vector.multi_reduction <add>, %36, %cst_20 [1, 2] : vector<1x128x1xf32> to vector<1xf32>
      %38 = vector.shape_cast %37 : vector<1xf32> to vector<1x1x1xf32>
      %39 = vector.extract %38[0, 0, 0] : f32 from vector<1x1x1xf32>
      %40 = vector.broadcast %39 : f32 to vector<1x1x1x1xf32>
      %c0_21 = arith.constant 0 : index
      %c0_22 = arith.constant 0 : index
      %c0_23 = arith.constant 0 : index
      %c0_24 = arith.constant 0 : index
      %41 = vector.load %arg6[%c0_21, %c0_22, %c0_23, %c0_24] : memref<1x1x1x1xf32, #tpu.memory_space<vmem>>, vector<1x1x1x1xf32>
      tpu.vector_store %arg6[%c0_21, %c0_22, %c0_23, %c0_24], %40 {strides = array<i32>} : memref<1x1x1x1xf32, #tpu.memory_space<vmem>>, vector<1x1x1x1xf32>,
    } else {
    }
    return
  }
  func.func @transform_0(%arg0: i32, %arg1: i32, %arg2: i32) -> (i32, i32, i32) {
    %c0_i32 = arith.constant 0 : i32
    %c0_i32_0 = arith.constant 0 : i32
    return %arg0, %arg1, %c0_i32 : i32, i32, i32
  }
  func.func @transform_1(%arg0: i32, %arg1: i32, %arg2: i32) -> (i32, i32, i32) {
    %c0_i32 = arith.constant 0 : i32
    %c0_i32_0 = arith.constant 0 : i32
    return %arg0, %c0_i32, %arg2 : i32, i32, i32
  }
  func.func @transform_2(%arg0: i32, %arg1: i32, %arg2: i32) -> (i32, i32, i32) {
    %c0_i32 = arith.constant 0 : i32
    %c0_i32_0 = arith.constant 0 : i32
    return %arg0, %c0_i32, %arg2 : i32, i32, i32
  }
  func.func @transform_3(%arg0: i32, %arg1: i32, %arg2: i32) -> (i32, i32, i32, i32) {
    %c0_i32 = arith.constant 0 : i32
    %c0_i32_0 = arith.constant 0 : i32
    %c0_i32_1 = arith.constant 0 : i32
    return %arg0, %arg1, %c0_i32, %c0_i32_0 : i32, i32, i32, i32
  }
}

</mosaic_0001>

<bundles_post_ra>
// kernel: tpu_custom_call.1
= control target key start
LH: loop header
LB: loop body
LE: loop exit
PB: predicated region body
PF: predicated region fallthrough
CT: control target
= control target key end

     0   :  { %s1181_s12 = smov 0   ;;  %s1183_s13 = smov 0   ;;  %s1502_s0 = inlined_call_operand.vmem [shape: f32[2,256,8], index: 0, kind: input, shape index: {}]   ;;  %s1503_s1 = inlined_call_operand.vmem [shape: f32[2,8,384], index: 1, kind: input, shape index: {}]   ;;  %s1504_s2 = inlined_call_operand.vmem [shape: f32[2,1,384], index: 2, kind: input, shape index: {}]   ;;  %s1505_s3 = inlined_call_operand.vmem [shape: f32[2,2,1,1], index: 3, kind: output, shape index: {}]  }
   0x1   :  { %s1185_s14 = smov 0   ;;  %s1187_s15 = smov 0  }
   0x2   :  { %s1189_s16 = smov 0   ;;  %s1191_s17 = smov 0  }
   0x3   :  { %s1193_s18 = smov 0  }
   0x4 LB: > { %s25_s19 = sadd.s32 1, %s1146_s15  ;;  %s28_s20 = sadd.s32 1, %s1150_s16  ;;  %s1158_s18 = sphi %s1193_s18, %s13_s18   ;;  %s1154_s17 = sphi %s1191_s17, %s1511_s17   ;;  %s1150_s16 = sphi %s1189_s16, %s1510_s16   ;;  %s1146_s15 = sphi %s1187_s15, %s1509_s15   ;;  %s1142_s14 = sphi %s1185_s14, %s1508_s14   ;;  %s1138_s13 = sphi %s1183_s13, %s1507_s13   ;;  %s1134_s12 = sphi %s1181_s12, %s1506_s12  }
   0x5   : > { %p26_p0 = scmp.ge.s32.totalorder %s25_s19, 3  ;;  %p971_p1 = scmp.ge.s32.totalorder %s1158_s18, 1 }
   0x6   : > { %p194_p2 = scmp.lt.s32.totalorder %s1158_s18, 13  ;;  %s32_s21 = sadd.s32 1, %s1154_s17 }
   0x7   : > { %s1513_s19 = smov (%p26_p0, %s25_s19), 0  ;;  %s1515_s20 = smov (!%p26_p0, %s28_s20), %s1150_s16 }
   0x8   : > { %p195_p3 = pnand %p971_p1, %p194_p2  ;;  %p30_p4 = scmp.ge.s32.totalorder %s1515_s20, 2 }
   0x9   : > { %s972_s22 = sshll.u32 (!%p195_p3), %s1138_s13, 4  ;;  %p240_p6 = scmp.lt.s32.totalorder (!%p195_p3), %s1142_s14, 1 }
   0xa   : > { %s1517_s20 = smov (%p30_p4, %s1515_s20), 0  ;;  %s1519_s21 = smov (!%p30_p4, %s32_s21), %s1154_s17 }
   0xb   : > { %p34_p5 = scmp.ge.s32.totalorder %s1519_s21, 2  ;;  %198 = sbr.rel (%p195_p3) target bundleno = 678 (0x2a6), region = 32 }
   0xc   : > { %p242_p7 = scmp.lt.s32.totalorder (!%p195_p3), %s972_s22, 31  ;;  %p251_p8 = scmp.lt.s32.totalorder (!%p195_p3), %s1134_s12, 2 }
   0xd   : > { %s1521_s21 = smov (%p34_p5, %s1519_s21), 0  ;;  %p266_p9 = scmp.lt.s32.totalorder (!%p195_p3), %s1138_s13, 1 }
   0xe   : > { %p977_p10 = scmp.ne.s32.totalorder (!%p195_p3), %s1134_s12, 0 }
  0x12   : > { %s1523_s14 = smov (!%p240_p6, %s1142_s14), 1  ;;  %s1525_s22 = smov (!%p242_p7, %s972_s22), 31 }
  0x13   : > { %s973_s23 = sshll.u32 %s1523_s14, 5  ;;  %s1044_s26 = smul.u32 3, %s1523_s14  ;;  %v1160_v0 = vmov (!%p977_p10), inf  }
  0x14   : > { %s245_s24 = sadd.s32 %s973_s23, %s1525_s22  ;;  %s976_s30 = sshll.u32 %s1523_s14, 1  ;;  %275 = vst [vmem:[#allocation2] sm:$0xff] (!%p977_p10), %v1160_v0  ;;  %276 = vst [vmem:[#allocation2 + $0x8] sm:$0xff] (!%p977_p10), %v1160_v0 }
  0x15   : > { %s974_s25 = sshll.u32 %s245_s24, 3  ;;  %277 = vst [vmem:[#allocation2 + $0x10] sm:$0xff] (!%p977_p10), %v1160_v0  ;;  %278 = vst [vmem:[#allocation2 + $0x18] sm:$0xff] (!%p977_p10), %v1160_v0 }
  0x16   : > { %s1233_s29 = scalar_lea.vmem %s1502_s0, %s974_s25  ;;  %274 = sbr.rel (%p977_p10) target bundleno = 30 (0x1e), region = 36  ;;  %279 = vst [vmem:[#allocation2 + $0x20] sm:$0xff] (!%p977_p10), %v1160_v0  ;;  %280 = vst [vmem:[#allocation2 + $0x28] sm:$0xff] (!%p977_p10), %v1160_v0 }
  0x17   : > { %s252_s4 = scalar_select %p251_p8, %s1134_s12, 2 }
  0x18   : > { %s267_s5 = scalar_select %p266_p9, %s1138_s13, 1 }
  0x19   : > { %s1237_s6 = sadd.s32 %s1044_s26, %s252_s4  ;;  %281 = vst [vmem:[#allocation2 + $0x30] sm:$0xff] (!%p977_p10), %v1160_v0  ;;  %282 = vst [vmem:[#allocation2 + $0x38] sm:$0xff] (!%p977_p10), %v1160_v0 }
  0x1a   : > { %s975_s7 = sshll.u32 %s1237_s6, 3  ;;  %s263_s10 = scalar_lea.vmem %s1504_s2, %s1237_s6  ;;  %283 = vst [vmem:[#allocation2 + $0x40] sm:$0xff] (!%p977_p10), %v1160_v0  ;;  %284 = vst [vmem:[#allocation2 + $0x48] sm:$0xff] (!%p977_p10), %v1160_v0 }
  0x1b   : > { %s256_s23 = scalar_lea.vmem %s1503_s1, %s975_s7  ;;  %s1247_s24 = sadd.s32 %s976_s30, %s267_s5  ;;  %285 = vst [vmem:[#allocation2 + $0x50] sm:$0xff] (!%p977_p10), %v1160_v0  ;;  %286 = vst [vmem:[#allocation2 + $0x58] sm:$0xff] (!%p977_p10), %v1160_v0 }
  0x1c   : > { %s270_s27 = scalar_lea.vmem %s1505_s3, %s1247_s24  ;;  %287 = vst [vmem:[#allocation2 + $0x60] sm:$0xff] (!%p977_p10), %v1160_v0  ;;  %288 = vst [vmem:[#allocation2 + $0x68] sm:$0xff] (!%p977_p10), %v1160_v0 }
  0x1d   : > { %289 = vst [vmem:[#allocation2 + $0x70] sm:$0xff] %v1160_v0  ;;  %290 = vst [vmem:[#allocation2 + $0x78] sm:$0xff] %v1160_v0 }
  0x1e PF: > { %v307_v1 = vld [vmem:[%s256_s23] sm:$0xff]  ;;  %vm325_vm0 = vcmask 64512   ;;  %v1265_v6 = vld [vmem:[%s1233_s29 + $0x8] sm:$0xff]  ;;  %v1271_v8 = vld [vmem:[%s1233_s29 + $0x10] sm:$0xff]  ;;  %p995_p11 = scmp.ne.s32.totalorder %s1134_s12, 2 }
  0x1f   : > { %v1255_v2 = vld [vmem:[%s1233_s29] sm:$0xff]  ;;  %1016 = vmatprep.subr.mxu0 %v307_v1  ;;  %1042 = vmatprep.subr.mxu1 %v307_v1  ;;  %v1268_v7 = vld [vmem:[%s1233_s29 + $0x48] sm:$0xff]  ;;  %v310_v9 = vadd.f32 %v1265_v6, %v1265_v6  ;;  %v311_v11 = vadd.f32 %v1271_v8, %v1271_v8  ;;  %v1280_v12 = vld [vmem:[%s1233_s29 + $0x50] sm:$0xff]  ;;  %s996_s12 = sshll.u32 (!%p995_p11), %s1138_s13, 7  ;;  %vm804_vm4 = vcmask (!%p995_p11), 7168  }
  0x20   : > { %v1258_v3 = vld [vmem:[%s1233_s29 + $0x40] sm:$0xff]  ;;  %v309_v4 = vadd.f32 %v1255_v2, %v1255_v2  ;;  %1017 = vmatpush3.msra.mxu0 %v307_v1  ;;  %1043 = vmatpush3.msra.mxu1 %v307_v1  ;;  %v318_v10 = vadd.f32 %v1268_v7, %v1268_v7  ;;  %v1283_v13 = vld [vmem:[%s1233_s29 + $0x18] sm:$0xff]  ;;  %v319_v15 = vadd.f32 %v1280_v12, %v1280_v12  ;;  %v1311_v22 = vld [vmem:[%s1233_s29 + $0x28] sm:$0xff] }
  0x21   : > { %v317_v5 = vadd.f32 %v1258_v3, %v1258_v3  ;;  %v1286_v14 = vld [vmem:[%s1233_s29 + $0x58] sm:$0xff]  ;;  %v1293_v16 = vld [vmem:[%s1233_s29 + $0x20] sm:$0xff]  ;;  %v312_v18 = vadd.f32 %v1283_v13, %v1283_v13  ;;  %v1314_v23 = vld [vmem:[%s1233_s29 + $0x68] sm:$0xff]  ;;  %v314_v26 = vadd.f32 %v1311_v22, %v1311_v22 }
  0x22   : > { %1018 = vmatprep.mubr.msk.f32.mxu0 %vm325_vm0, %v309_v4  ;;  %v1296_v17 = vld [vmem:[%s1233_s29 + $0x60] sm:$0xff]  ;;  %v320_v19 = vadd.f32 %v1286_v14, %v1286_v14  ;;  %v313_v20 = vadd.f32 %v1293_v16, %v1293_v16  ;;  %v1317_v24 = vld [vmem:[%s1233_s29 + $0x30] sm:$0xff]  ;;  %v322_v27 = vadd.f32 %v1314_v23, %v1314_v23  ;;  %v1335_v30 = vld [vmem:[%s1233_s29 + $0x38] sm:$0xff] }
  0x23   : > { %1030 = vmatprep.mubr.msk.f32.mxu1 %vm325_vm0, %v317_v5  ;;  %1019 = vmatmul.mubr.msk.f32.vlgmr.msra.gmra.mrb[0].mxu0 %vm325_vm0, %v310_v9  ;;  %v321_v21 = vadd.f32 %v1296_v17, %v1296_v17  ;;  %v1320_v25 = vld [vmem:[%s1233_s29 + $0x70] sm:$0xff]  ;;  %v315_v28 = vadd.f32 %v1317_v24, %v1317_v24  ;;  %v1338_v31 = vld [vmem:[%s1233_s29 + $0x78] sm:$0xff]  ;;  %v316_v32 = vadd.f32 %v1335_v30, %v1335_v30  ;;  %v1355_v34 = vld [vmem:[%s263_s10] ss:$0 sm:$0xff] }
  0x24   : > { %1031 = vmatmul.mubr.msk.f32.vlgmr.msra.gmra.mrb[0].mxu1 %vm325_vm0, %v318_v10  ;;  %1021 = vmatprep.mubr.msk.f32.mxu0 %vm325_vm0, %v311_v11  ;;  %v323_v29 = vadd.f32 %v1320_v25, %v1320_v25  ;;  %v324_v33 = vadd.f32 %v1338_v31, %v1338_v31  ;;  %v542_v36 = vld [vmem:[#allocation2 + $0x8] sm:$0xff]  ;;  %v541_v42 = vld [vmem:[#allocation2] sm:$0xff]  ;;  %v544_v52 = vld [vmem:[#allocation2 + $0x18] sm:$0xff] }
  0x25   : > { %1033 = vmatprep.mubr.msk.f32.mxu1 %vm325_vm0, %v319_v15  ;;  %v550_v38 = vld [vmem:[#allocation2 + $0x48] sm:$0xff]  ;;  %v549_v44 = vld [vmem:[#allocation2 + $0x40] sm:$0xff]  ;;  %v552_v54 = vld [vmem:[#allocation2 + $0x58] sm:$0xff] }
  0x26   : > { %v543_v58 = vld [vmem:[#allocation2 + $0x10] sm:$0xff]  ;;  %v546_v9 = vld [vmem:[#allocation2 + $0x28] sm:$0xff] }
  0x27   : > { %1022 = vmatmul.mubr.msk.f32.gmra.mrb[2].mxu0 %vm325_vm0, %v312_v18  ;;  %v551_v60 = vld [vmem:[#allocation2 + $0x50] sm:$0xff]  ;;  %v554_v11 = vld [vmem:[#allocation2 + $0x68] sm:$0xff] }
  0x28   : > { %1034 = vmatmul.mubr.msk.f32.gmra.mrb[2].mxu1 %vm325_vm0, %v320_v19  ;;  %1024 = vmatprep.mubr.msk.f32.mxu0 %vm325_vm0, %v313_v20  ;;  %v545_v20 = vld [vmem:[#allocation2 + $0x20] sm:$0xff] }
  0x29   : > { %1036 = vmatprep.mubr.msk.f32.mxu1 %vm325_vm0, %v321_v21 }
  0x2b   : > { %1025 = vmatmul.mubr.msk.f32.gmra.mrb[4].mxu0 %vm325_vm0, %v314_v26  ;;  %v553_v26 = vld [vmem:[#allocation2 + $0x60] sm:$0xff] }
  0x2c   : > { %1037 = vmatmul.mubr.msk.f32.gmra.mrb[4].mxu1 %vm325_vm0, %v322_v27  ;;  %1027 = vmatprep.mubr.msk.f32.mxu0 %vm325_vm0, %v315_v28 }
  0x2d   : > { %1039 = vmatprep.mubr.msk.f32.mxu1 %vm325_vm0, %v323_v29 }
  0x2f   : > { %1028 = vmatmul.mubr.msk.f32.gmra.mrb[6].mxu0 %vm325_vm0, %v316_v32 }
  0x30   : > { %1040 = vmatmul.mubr.msk.f32.gmra.mrb[6].mxu1 %vm325_vm0, %v324_v33 }
  0xf6   : > { %v1020_v35 = vpop.f32.mrb[0].mxu0 }
  0xf7   : > { %v1032_v37 = vpop.f32.mrb[0].mxu1  ;;  %v526_v39 = vsub.f32 %v1355_v34, %v1020_v35  ;;  %v440_v41 = vpop.f32.mrb[1].mxu0 }
  0xf8   : > { %v534_v40 = vsub.f32 %v1355_v34, %v1032_v37  ;;  %v480_v43 = vpop.f32.mrb[1].mxu1  ;;  %v525_v45 = vsub.f32 %v1355_v34, %v440_v41  ;;  %v548_v37 = vld [vmem:[#allocation2 + $0x38] sm:$0xff] }
  0xf9   : > { %v533_v46 = vsub.f32 %v1355_v34, %v480_v43  ;;  %v558_v47 = vmin.f32 %v542_v36, %v526_v39  ;;  %v556_v39 = vld [vmem:[#allocation2 + $0x78] sm:$0xff]  ;;  %v547_v43 = vld [vmem:[#allocation2 + $0x30] sm:$0xff] }
  0xfa   : > { %v566_v48 = vmin.f32 %v550_v38, %v534_v40  ;;  %v557_v49 = vmin.f32 %v541_v42, %v525_v45  ;;  %v1023_v51 = vpop.f32.mrb[2].mxu0  ;;  %v555_v45 = vld [vmem:[#allocation2 + $0x70] sm:$0xff] }
  0xfb   : > { %v565_v50 = vmin.f32 %v549_v44, %v533_v46  ;;  %v1035_v53 = vpop.f32.mrb[2].mxu1  ;;  %574 = vst [vmem:[#allocation2 + $0x8] sm:$0xff] %v558_v47  ;;  %v528_v55 = vsub.f32 %v1355_v34, %v1023_v51  ;;  %v450_v57 = vpop.f32.mrb[3].mxu0 }
  0xfc   : > { %582 = vst [vmem:[#allocation2 + $0x48] sm:$0xff] %v566_v48  ;;  %v536_v56 = vsub.f32 %v1355_v34, %v1035_v53  ;;  %v490_v59 = vpop.f32.mrb[3].mxu1  ;;  %573 = vst [vmem:[#allocation2] sm:$0xff] %v557_v49  ;;  %v527_v61 = vsub.f32 %v1355_v34, %v450_v57  ;;  %v593_v53 = vmul.f32 (!%p995_p11), %v1255_v2, %v1255_v2 }
  0xfd   : > { %581 = vst [vmem:[#allocation2 + $0x40] sm:$0xff] %v565_v50  ;;  %v535_v62 = vsub.f32 %v1355_v34, %v490_v59  ;;  %v560_v63 = vmin.f32 %v544_v52, %v528_v55  ;;  %v595_v57 = vmul.f32 (!%p995_p11), %v1271_v8, %v1271_v8  ;;  %v596_v2 = vmul.f32 (!%p995_p11), %v1283_v13, %v1283_v13 }
  0xfe   : > { %v568_v0 = vmin.f32 %v552_v54, %v536_v56  ;;  %v559_v1 = vmin.f32 %v543_v58, %v527_v61  ;;  %v1026_v5 = vpop.f32.mrb[4].mxu0  ;;  %v594_v54 = vmul.f32 (!%p995_p11), %v1265_v6, %v1265_v6  ;;  %v597_v61 = vmul.f32 (!%p995_p11), %v1293_v16, %v1293_v16 }
  0xff   : > { %v567_v4 = vmin.f32 %v551_v60, %v535_v62  ;;  %v1038_v10 = vpop.f32.mrb[4].mxu1  ;;  %576 = vst [vmem:[#allocation2 + $0x18] sm:$0xff] %v560_v63  ;;  %v530_v15 = vsub.f32 %v1355_v34, %v1026_v5  ;;  %v460_v19 = vpop.f32.mrb[5].mxu0  ;;  %v615_v59 = vsel (!%p995_p11), %vm325_vm0, %v595_v57, 0.0  ;;  %v618_v60 = vsel (!%p995_p11), %vm325_vm0, %v596_v2, 0.0 }
 0x100   : > { %584 = vst [vmem:[#allocation2 + $0x58] sm:$0xff] %v568_v0  ;;  %v538_v18 = vsub.f32 %v1355_v34, %v1038_v10  ;;  %v500_v21 = vpop.f32.mrb[5].mxu1  ;;  %575 = vst [vmem:[#allocation2 + $0x10] sm:$0xff] %v559_v1  ;;  %v529_v27 = vsub.f32 %v1355_v34, %v460_v19  ;;  %v612_v56 = vsel (!%p995_p11), %vm325_vm0, %v594_v54, 0.0  ;;  %v621_v8 = vsel (!%p995_p11), %vm325_vm0, %v597_v61, 0.0 }
 0x101   : > { %583 = vst [vmem:[#allocation2 + $0x50] sm:$0xff] %v567_v4  ;;  %v537_v28 = vsub.f32 %v1355_v34, %v500_v21  ;;  %v562_v29 = vmin.f32 %v546_v9, %v530_v15  ;;  %v598_v63 = vmul.f32 (!%p995_p11), %v1311_v22, %v1311_v22  ;;  %v599_v1 = vmul.f32 (!%p995_p11), %v1317_v24, %v1317_v24 }
 0x102   : > { %v570_v32 = vmin.f32 %v554_v11, %v538_v18  ;;  %v561_v33 = vmin.f32 %v545_v20, %v529_v27  ;;  %v1029_v36 = vpop.f32.mrb[6].mxu0  ;;  %v658_v55 = vld [vmem:[#allocation2 + $0x8] sm:$0xff] (!%p995_p11)  ;;  %v600_v5 = vmul.f32 (!%p995_p11), %v1335_v30, %v1335_v30  ;;  %v601_v10 = vmul.f32 (!%p995_p11), %v1258_v3, %v1258_v3 }
 0x103   : > { %v569_v35 = vmin.f32 %v553_v26, %v537_v28  ;;  %v1041_v38 = vpop.f32.mrb[6].mxu1  ;;  %578 = vst [vmem:[#allocation2 + $0x28] sm:$0xff] %v562_v29  ;;  %v532_v40 = vsub.f32 %v1355_v34, %v1029_v36  ;;  %v470_v42 = vpop.f32.mrb[7].mxu0  ;;  %592 = sbr.rel (%p995_p11) target bundleno = 678 (0x2a6), region = 40  ;;  %v657_v52 = vld [vmem:[#allocation2] sm:$0xff] (!%p995_p11)  ;;  %v624_v13 = vsel (!%p995_p11), %vm325_vm0, %v598_v63, 0.0  ;;  %v602_v15 = vmul.f32 (!%p995_p11), %v1268_v7, %v1268_v7 }
 0x104   : > { %586 = vst [vmem:[#allocation2 + $0x68] sm:$0xff] %v570_v32  ;;  %v540_v41 = vsub.f32 %v1355_v34, %v1041_v38  ;;  %v510_v44 = vpop.f32.mrb[7].mxu1  ;;  %577 = vst [vmem:[#allocation2 + $0x20] sm:$0xff] %v561_v33  ;;  %v531_v46 = vsub.f32 %v1355_v34, %v470_v42  ;;  %673 = vmin.xlane.f32.xlu1 (!%p995_p11), %v657_v52  ;;  %v627_v16 = vsel (!%p995_p11), %vm325_vm0, %v599_v1, 0.0  ;;  %v630_v22 = vsel (!%p995_p11), %vm325_vm0, %v600_v5, 0.0  ;;  %v665_v11 = vld [vmem:[#allocation2 + $0x40] sm:$0xff] (!%p995_p11) }
 0x105   : > { %585 = vst [vmem:[#allocation2 + $0x60] sm:$0xff] %v569_v35  ;;  %v539_v47 = vsub.f32 %v1355_v34, %v510_v44  ;;  %v564_v48 = vmin.f32 %v548_v37, %v532_v40  ;;  %v609_v34 = vsel (!%p995_p11), %vm325_vm0, %v593_v53, 0.0  ;;  %v633_v24 = vsel (!%p995_p11), %vm325_vm0, %v601_v10, 0.0  ;;  %v666_v18 = vld [vmem:[#allocation2 + $0x48] sm:$0xff] (!%p995_p11) }
 0x106   : > { %v572_v49 = vmin.f32 %v556_v39, %v540_v41  ;;  %v563_v50 = vmin.f32 %v547_v43, %v531_v46  ;;  %610 = vadd.xlane.f32.xlu0 (!%p995_p11), %v609_v34  ;;  %v660_v6 = vld [vmem:[#allocation2 + $0x18] sm:$0xff] (!%p995_p11)  ;;  %v636_v30 = vsel (!%p995_p11), %vm325_vm0, %v602_v15, 0.0  ;;  %v603_v19 = vmul.f32 (!%p995_p11), %v1280_v12, %v1280_v12 }
 0x107   : > { %v571_v51 = vmin.f32 %v555_v45, %v539_v47  ;;  %580 = vst [vmem:[#allocation2 + $0x38] sm:$0xff] %v564_v48  ;;  %v659_v58 = vld [vmem:[#allocation2 + $0x10] sm:$0xff] (!%p995_p11)  ;;  %v604_v21 = vmul.f32 (!%p995_p11), %v1286_v14, %v1286_v14  ;;  %v668_v26 = vld [vmem:[#allocation2 + $0x58] sm:$0xff] (!%p995_p11)  ;;  %v605_v27 = vmul.f32 (!%p995_p11), %v1296_v17, %v1296_v17  ;;  %v606_v29 = vmul.f32 (!%p995_p11), %v1314_v23, %v1314_v23 }
 0x108   : > { %588 = vst [vmem:[#allocation2 + $0x78] sm:$0xff] %v572_v49  ;;  %579 = vst [vmem:[#allocation2 + $0x30] sm:$0xff] %v563_v50  ;;  %675 = vmin.xlane.f32.xlu1 (!%p995_p11), %v658_v55  ;;  %v667_v20 = vld [vmem:[#allocation2 + $0x50] sm:$0xff] (!%p995_p11)  ;;  %v639_v3 = vsel (!%p995_p11), %vm325_vm0, %v603_v19, 0.0  ;;  %v607_v33 = vmul.f32 (!%p995_p11), %v1320_v25, %v1320_v25  ;;  %v608_v36 = vmul.f32 (!%p995_p11), %v1338_v31, %v1338_v31  ;;  %v737_v46 = vlaneseq (!%p995_p11) }
 0x109   : > { %587 = vst [vmem:[#allocation2 + $0x70] sm:$0xff] %v571_v51  ;;  %v642_v7 = vsel (!%p995_p11), %vm325_vm0, %v604_v21, 0.0  ;;  %v645_v12 = vsel (!%p995_p11), %vm325_vm0, %v605_v27, 0.0  ;;  %v648_v14 = vsel (!%p995_p11), %vm325_vm0, %v606_v29, 0.0  ;;  %v1427_v54 = vstv (!%p995_p11), %s996_s12 }
 0x10a   : > { %613 = vadd.xlane.f32.xlu0 %v612_v56  ;;  %v662_v0 = vld [vmem:[#allocation2 + $0x28] sm:$0xff]  ;;  %v651_v17 = vsel %vm325_vm0, %v607_v33, 0.0  ;;  %v654_v23 = vsel %vm325_vm0, %v608_v36, 0.0  ;;  %v1422_v48 = vshrl.u32 %v737_v46, 7 }
 0x10b   : > { %v661_v62 = vld [vmem:[#allocation2 + $0x20] sm:$0xff]  ;;  %v670_v32 = vld [vmem:[#allocation2 + $0x68] sm:$0xff] }
 0x10c   : > { %677 = vmin.xlane.f32.xlu1 %v659_v58  ;;  %v669_v28 = vld [vmem:[#allocation2 + $0x60] sm:$0xff]  ;;  %v739_v50 = vadd.s32 8, %v1422_v48  ;;  %v740_v52 = vadd.s32 16, %v1422_v48  ;;  %v741_v56 = vadd.s32 24, %v1422_v48  ;;  %v756_v2 = vadd.s32 %v1427_v54, %v1422_v48 }
 0x10d   : > { %v743_v63 = vadd.s32 40, %v1422_v48  ;;  %v746_v27 = vadd.s32 64, %v1422_v48 }
 0x10e   : > { %616 = vadd.xlane.f32.xlu0 %v615_v59  ;;  %v664_v9 = vld [vmem:[#allocation2 + $0x38] sm:$0xff]  ;;  %v757_v55 = vadd.s32 %v1427_v54, %v739_v50  ;;  %vm772_vm2 = vcmp.lt.s32.totalorder %v756_v2, 200  ;;  %v749_v50 = vadd.s32 88, %v1422_v48 }
 0x10f   : > { %v663_v4 = vld [vmem:[#allocation2 + $0x30] sm:$0xff]  ;;  %v672_v37 = vld [vmem:[#allocation2 + $0x78] sm:$0xff] }
 0x110   : > { %679 = vmin.xlane.f32.xlu1 %v660_v6  ;;  %v671_v35 = vld [vmem:[#allocation2 + $0x70] sm:$0xff]  ;;  %v758_v6 = vadd.s32 %v1427_v54, %v740_v52  ;;  %vm773_vm1 = vcmp.lt.s32.totalorder %v757_v55, 200 }
 0x112   : > { %619 = vadd.xlane.f32.xlu0 %v618_v60  ;;  %v742_v60 = vadd.s32 32, %v1422_v48  ;;  %vm774_vm3 = vcmp.lt.s32.totalorder %v758_v6, 200 }
 0x114   : > { %681 = vmin.xlane.f32.xlu1 %v661_v62  ;;  %v760_v5 = vadd.s32 %v1427_v54, %v742_v60 }
 0x116   : > { %622 = vadd.xlane.f32.xlu0 %v621_v8  ;;  %vm776_vm6 = vcmp.lt.s32.totalorder %v760_v5, 200 }
 0x118   : > { %683 = vmin.xlane.f32.xlu1 %v662_v0  ;;  %v759_v0 = vadd.s32 %v1427_v54, %v741_v56 }
 0x11a   : > { %625 = vadd.xlane.f32.xlu0 %v624_v13  ;;  %vm775_vm5 = vcmp.lt.s32.totalorder %v759_v0, 200 }
 0x11c   : > { %685 = vmin.xlane.f32.xlu1 %v663_v4 }
 0x11e   : > { %628 = vadd.xlane.f32.xlu0 %v627_v16 }
 0x120   : > { %687 = vmin.xlane.f32.xlu1 %v664_v9  ;;  %v744_v9 = vadd.s32 48, %v1422_v48 }
 0x122   : > { %631 = vadd.xlane.f32.xlu0 %v630_v22 }
 0x124   : > { %689 = vmin.xlane.f32.xlu1 %v665_v11 }
 0x126   : > { %634 = vadd.xlane.f32.xlu0 %v633_v24  ;;  %v761_v24 = vadd.s32 %v1427_v54, %v743_v63  ;;  %v751_v63 = vadd.s32 104, %v1422_v48 }
 0x128   : > { %691 = vmin.xlane.f32.xlu1 %v666_v18  ;;  %v745_v18 = vadd.s32 56, %v1422_v48  ;;  %vm777_vm7 = vcmp.lt.s32.totalorder %v761_v24, 200 }
 0x12a   : > { %637 = vadd.xlane.f32.xlu0 %v636_v30 }
 0x12c   : > { %693 = vmin.xlane.f32.xlu1 %v667_v20 }
 0x12e   : > { %640 = vadd.xlane.f32.xlu0 %v639_v3 }
 0x130   : > { %695 = vmin.xlane.f32.xlu1 %v668_v26 }
 0x132   : > { %643 = vadd.xlane.f32.xlu0 %v642_v7  ;;  %v762_v7 = vadd.s32 %v1427_v54, %v744_v9 }
 0x134   : > { %697 = vmin.xlane.f32.xlu1 %v669_v28  ;;  %vm778_vm8 = vcmp.lt.s32.totalorder %v762_v7, 200 }
 0x136   : > { %646 = vadd.xlane.f32.xlu0 %v645_v12 }
 0x138   : > { %699 = vmin.xlane.f32.xlu1 %v670_v32 }
 0x13a   : > { %649 = vadd.xlane.f32.xlu0 %v648_v14 }
 0x13c   : > { %701 = vmin.xlane.f32.xlu1 %v671_v35  ;;  %v763_v35 = vadd.s32 %v1427_v54, %v745_v18  ;;  %v769_v18 = vadd.s32 %v1427_v54, %v751_v63 }
 0x13e   : > { %652 = vadd.xlane.f32.xlu0 %v651_v17  ;;  %v747_v17 = vadd.s32 72, %v1422_v48  ;;  %vm779_vm9 = vcmp.lt.s32.totalorder %v763_v35, 200  ;;  %vm785_vm15 = vcmp.lt.s32.totalorder %v769_v18, 200 }
 0x140   : > { %703 = vmin.xlane.f32.xlu1 %v672_v37 }
 0x142   : > { %655 = vadd.xlane.f32.xlu0 %v654_v23 }
 0x191   : > { %v674_v38 = vpop.xlane.xlu1 %673 }
 0x193   : > { %v611_v39 = vpop.xlane.xlu0 %610 }
 0x194   : > { %v705_v58 = vadd.f32 %v674_v38, %v611_v39 }
 0x195   : > { %v676_v40 = vpop.xlane.xlu1 %675 }
 0x196   : > { %v721_v1 = vmax.f32 %v705_v58, 0.0  ;;  %v750_v58 = vadd.s32 96, %v1422_v48 }
 0x197   : > { %v614_v25 = vpop.xlane.xlu0 %613 }
 0x198   : > { %v706_v34 = vadd.f32 %v676_v40, %v614_v25  ;;  %v788_v19 = vsel %vm772_vm2, %v721_v1, 0.0  ;;  %v764_v25 = vadd.s32 %v1427_v54, %v746_v27  ;;  %vm846_vm2 = vcmask 0  }
 0x199   : > { %v678_v41 = vpop.xlane.xlu1 %677  ;;  %v805_v14 = vsel %vm804_vm4, %v788_v19, 0.0 }
 0x19a   : > { %v722_v62 = vmax.f32 %v706_v34, 0.0  ;;  %vm780_vm10 = vcmp.lt.s32.totalorder %v764_v25, 200 }
 0x19b   : > { %v617_v42 = vpop.xlane.xlu0 %616 }
 0x19c   : > { %v707_v59 = vadd.f32 %v678_v41, %v617_v42  ;;  %v789_v10 = vsel %vm773_vm1, %v722_v62, 0.0  ;;  %v748_v41 = vadd.s32 80, %v1422_v48  ;;  %v767_v62 = vadd.s32 %v1427_v54, %v749_v50 }
 0x19d   : > { %v680_v43 = vpop.xlane.xlu1 %679  ;;  %v806_v26 = vsel %vm804_vm4, %v789_v10, 0.0 }
 0x19e   : > { %v723_v4 = vmax.f32 %v707_v59, 0.0  ;;  %v807_v37 = vadd.f32 %v806_v26, %v805_v14  ;;  %v766_v56 = vadd.s32 %v1427_v54, %v748_v41  ;;  %vm783_vm13 = vcmp.lt.s32.totalorder %v767_v62, 200 }
 0x19f   : > { %v620_v44 = vpop.xlane.xlu0 %619  ;;  %v753_v14 = vadd.s32 120, %v1422_v48 }
 0x1a0   : > { %v708_v8 = vadd.f32 %v680_v43, %v620_v44  ;;  %v790_v20 = vsel %vm774_vm3, %v723_v4, 0.0  ;;  %vm782_vm12 = vcmp.lt.s32.totalorder %v766_v56, 200 }
 0x1a1   : > { %v682_v45 = vpop.xlane.xlu1 %681  ;;  %v808_v33 = vsel %vm804_vm4, %v790_v20, 0.0  ;;  %v771_v41 = vadd.s32 %v1427_v54, %v753_v14 }
 0x1a2   : > { %v724_v11 = vmax.f32 %v708_v8, 0.0  ;;  %v809_v43 = vadd.f32 %v808_v33, %v807_v37 }
 0x1a3   : > { %v623_v47 = vpop.xlane.xlu0 %622  ;;  %vm787_vm1 = vcmp.lt.s32.totalorder %v771_v41, 200 }
 0x1a4   : > { %v709_v16 = vadd.f32 %v682_v45, %v623_v47  ;;  %v791_v12 = vsel %vm775_vm5, %v724_v11, 0.0 }
 0x1a5   : > { %v684_v31 = vpop.xlane.xlu1 %683  ;;  %v810_v40 = vsel %vm804_vm4, %v791_v12, 0.0 }
 0x1a6   : > { %v725_v3 = vmax.f32 %v709_v16, 0.0  ;;  %v768_v16 = vadd.s32 %v1427_v54, %v750_v58 }
 0x1a7   : > { %v626_v49 = vpop.xlane.xlu0 %625 }
 0x1a8   : > { %v710_v15 = vadd.f32 %v684_v31, %v626_v49  ;;  %v792_v23 = vsel %vm776_vm6, %v725_v3, 0.0  ;;  %v765_v31 = vadd.s32 %v1427_v54, %v747_v17  ;;  %vm784_vm14 = vcmp.lt.s32.totalorder %v768_v16, 200 }
 0x1a9   : > { %v686_v51 = vpop.xlane.xlu1 %685  ;;  %v812_v47 = vsel %vm804_vm4, %v792_v23, 0.0 }
 0x1aa   : > { %v726_v29 = vmax.f32 %v710_v15, 0.0  ;;  %vm781_vm11 = vcmp.lt.s32.totalorder %v765_v31, 200 }
 0x1ab   : > { %v629_v53 = vpop.xlane.xlu0 %628 }
 0x1ac   : > { %v711_v21 = vadd.f32 %v686_v51, %v629_v53  ;;  %v793_v44 = vsel %vm777_vm7, %v726_v29, 0.0  ;;  %v811_v51 = vadd.f32 %v810_v40, %v809_v43 }
 0x1ad   : > { %v688_v57 = vpop.xlane.xlu1 %687  ;;  %v814_v55 = vsel %vm804_vm4, %v793_v44, 0.0 }
 0x1ae   : > { %v727_v38 = vmax.f32 %v711_v21, 0.0  ;;  %v813_v59 = vadd.f32 %v812_v47, %v811_v51 }
 0x1af   : > { %v632_v61 = vpop.xlane.xlu0 %631 }
 0x1b0   : > { %v712_v32 = vadd.f32 %v688_v57, %v632_v61  ;;  %v794_v52 = vsel %vm778_vm8, %v727_v38, 0.0  ;;  %v815_v0 = vadd.f32 %v814_v55, %v813_v59 }
 0x1b1   : > { %v690_v13 = vpop.xlane.xlu1 %689  ;;  %v816_v61 = vsel %vm804_vm4, %v794_v52, 0.0 }
 0x1b2   : > { %v728_v45 = vmax.f32 %v712_v32, 0.0  ;;  %v817_v9 = vadd.f32 %v816_v61, %v815_v0 }
 0x1b3   : > { %v635_v22 = vpop.xlane.xlu0 %634 }
 0x1b4   : > { %v713_v39 = vadd.f32 %v690_v13, %v635_v22  ;;  %v795_v2 = vsel %vm779_vm9, %v728_v45, 0.0 }
 0x1b5   : > { %v692_v30 = vpop.xlane.xlu1 %691  ;;  %v818_v4 = vsel %vm804_vm4, %v795_v2, 0.0 }
 0x1b6   : > { %v729_v53 = vmax.f32 %v713_v39, 0.0  ;;  %v819_v19 = vadd.f32 %v818_v4, %v817_v9 }
 0x1b7   : > { %v638_v28 = vpop.xlane.xlu0 %637 }
 0x1b8   : > { %v714_v46 = vadd.f32 %v692_v30, %v638_v28  ;;  %v796_v13 = vsel %vm780_vm10, %v729_v53, 0.0  ;;  %v752_v30 = vadd.s32 112, %v1422_v48 }
 0x1b9   : > { %v694_v36 = vpop.xlane.xlu1 %693  ;;  %v820_v24 = vsel %vm804_vm4, %v796_v13, 0.0 }
 0x1ba   : > { %v730_v6 = vmax.f32 %v714_v46, 0.0  ;;  %v821_v7 = vadd.f32 %v820_v24, %v819_v19  ;;  %v770_v32 = vadd.s32 %v1427_v54, %v752_v30 }
 0x1bb   : > { %v641_v42 = vpop.xlane.xlu0 %640 }
 0x1bc   : > { %v715_v34 = vadd.f32 %v694_v36, %v641_v42  ;;  %v797_v22 = vsel %vm781_vm11, %v730_v6, 0.0  ;;  %vm786_vm0 = vcmp.lt.s32.totalorder %v770_v32, 200 }
 0x1bd   : > { %v696_v49 = vpop.xlane.xlu1 %695  ;;  %v822_v21 = vsel %vm804_vm4, %v797_v22, 0.0 }
 0x1be   : > { %v731_v1 = vmax.f32 %v715_v34, 0.0  ;;  %v823_v33 = vadd.f32 %v822_v21, %v821_v7 }
 0x1bf   : > { %v644_v57 = vpop.xlane.xlu0 %643 }
 0x1c0   : > { %v716_v60 = vadd.f32 %v696_v49, %v644_v57  ;;  %v798_v20 = vsel %vm782_vm12, %v731_v1, 0.0 }
 0x1c1   : > { %v698_v8 = vpop.xlane.xlu1 %697  ;;  %v824_v12 = vsel %vm804_vm4, %v798_v20, 0.0 }
 0x1c2   : > { %v732_v10 = vmax.f32 %v716_v60, 0.0  ;;  %v825_v23 = vadd.f32 %v824_v12, %v823_v33 }
 0x1c3   : > { %v647_v5 = vpop.xlane.xlu0 %646 }
 0x1c4   : > { %v717_v11 = vadd.f32 %v698_v8, %v647_v5  ;;  %v799_v27 = vsel %vm783_vm13, %v732_v10, 0.0 }
 0x1c5   : > { %v700_v15 = vpop.xlane.xlu1 %699  ;;  %v826_v36 = vsel %vm804_vm4, %v799_v27, 0.0 }
 0x1c6   : > { %v733_v3 = vmax.f32 %v717_v11, 0.0  ;;  %v827_v42 = vadd.f32 %v826_v36, %v825_v23 }
 0x1c7   : > { %v650_v26 = vpop.xlane.xlu0 %649 }
 0x1c8   : > { %v718_v28 = vadd.f32 %v700_v15, %v650_v26  ;;  %v800_v35 = vsel %vm784_vm14, %v733_v3, 0.0 }
 0x1c9   : > { %v702_v29 = vpop.xlane.xlu1 %701  ;;  %v828_v40 = vsel %vm804_vm4, %v800_v35, 0.0 }
 0x1ca   : > { %v734_v17 = vmax.f32 %v718_v28, 0.0  ;;  %v829_v45 = vadd.f32 %v828_v40, %v827_v42 }
 0x1cb   : > { %v653_v37 = vpop.xlane.xlu0 %652 }
 0x1cc   : > { %v801_v38 = vsel %vm785_vm15, %v734_v17, 0.0  ;;  %v719_v39 = vadd.f32 %v702_v29, %v653_v37 }
 0x1cd   : > { %v704_v25 = vpop.xlane.xlu1 %703  ;;  %v830_v44 = vsel %vm804_vm4, %v801_v38, 0.0 }
 0x1ce   : > { %v735_v43 = vmax.f32 %v719_v39, 0.0  ;;  %v831_v49 = vadd.f32 %v830_v44, %v829_v45 }
 0x1cf   : > { %v656_v48 = vpop.xlane.xlu0 %655 }
 0x1d0   : > { %v802_v46 = vsel %vm786_vm0, %v735_v43, 0.0  ;;  %v720_v47 = vadd.f32 %v704_v25, %v656_v48 }
 0x1d1   : > { %v832_v31 = vsel %vm804_vm4, %v802_v46, 0.0 }
 0x1d2   : > { %v736_v50 = vmax.f32 %v720_v47, 0.0  ;;  %v833_v52 = vadd.f32 %v832_v31, %v831_v49 }
 0x1d4   : > { %v803_v51 = vsel %vm787_vm1, %v736_v50, 0.0 }
 0x1d5   : > { %v834_v53 = vsel %vm804_vm4, %v803_v51, 0.0 }
 0x1d6   : > { %v835_v34 = vadd.f32 %v834_v53, %v833_v52 }
 0x1d8   : > { %836 = vadd.xlane.f32.xlu0 %v835_v34 }
 0x265   : > { %v837_v54 = vpop.xlane.xlu0 %836 }
 0x266   : > { %v838_v55 = vrot.slane %v837_v54, 4 }
 0x268   : > { %v839_v56 = vadd.f32 %v838_v55, %v837_v54 }
 0x26a   : > { %v840_v57 = vrot.slane %v839_v56, 2 }
 0x26c   : > { %v841_v58 = vadd.f32 %v840_v57, %v839_v56 }
 0x26e   : > { %v842_v59 = vrot.slane %v841_v58, 1 }
 0x270   : > { %v843_v2 = vadd.f32 %v842_v59, %v841_v58 }
 0x272   : > { %1045 = vpush %v843_v2 }
 0x2a3   : > { %s1046_s13 = spop %1045 }
 0x2a4   : > { %v845_v6 = vstv %s1046_s13 }
 0x2a5   : > { %847 = vst.msk [vmem:[%s270_s27] sm:$0x1] %vm846_vm2, %v845_v6 }
 0x2a6 PF: > { %s13_s18 = sadd.s32 1, %s1158_s18   ;;  %s1506_s12 = smov %s1146_s15 }
 0x2a7   : > { %p10_p12 = scmp.ge.s32.totalorder %s13_s18, 14   ;;  %s1507_s13 = smov %s1150_s16 }
 0x2a8   : > { %s1508_s14 = smov %s1154_s17  ;;  %s1509_s15 = smov %s1513_s19 }
 0x2a9   : > { %s1510_s16 = smov %s1517_s20  ;;  %s1511_s17 = smov %s1521_s21 }
 0x2aa   :  { %12 = sbr.rel (!%p10_p12) target bundleno = 4 (0x4), region = 76 }

</bundles_post_ra>
